<compile_context>
chip_gen: v6e
topology: v6e:2x2x1
jax: 0.10.0
libtpu: 0.0.40
codegen_flags: <defaults>
</compile_context>

<pallas_src>
import functools

import jax
import jax.numpy as jnp
from jax import lax
from jax.experimental import pallas as pl
from jax.experimental.pallas import tpu as pltpu


def basic_block_kernel(B, H, x_ref, w1_ref, w2_ref, s1_ref, b1_ref,
                       s2_ref, b2_ref, o_ref,
                       xb16_ref, lhs1_ref, p1_ref, lhs2_ref):
    # x_ref   : (B*(H+4), W*C) f32    -- per image: rows 0,1 and H+2,H+3 zero
    # w*_ref  : (3*W*C, W*C)  bf16    -- block-Toeplitz conv weights, K = 3*W*C
    # s*/b*   : (1, W*C)      f32     -- folded BN scale / shift, tiled over W
    # o_ref   : (B*H, W*C)    f32
    # xb16_ref: (B*(H+4), W*C)   bf16 -- one-shot bf16 copy of the input slab
    # lhs1_ref: (B*(H+2), 3*W*C) bf16 -- fused conv1 LHS
    # p1_ref  : (B*(H+2), W*C)   bf16 -- halo'd conv1 output (bn1+relu applied)
    # lhs2_ref: (B*H, 3*W*C)     bf16 -- fused conv2 LHS
    Hp, Hpp = H + 2, H + 4
    WC = x_ref.shape[1]

    # ---- one-shot f32 -> bf16 cast of the whole activation block ----
    xb16_ref[...] = x_ref[...].astype(jnp.bfloat16)

    # ---- conv1: build (B*Hp, 3*WC) LHS, then ONE MXU matmul ----
    for b in range(B):
        for kh in range(3):
            lhs1_ref[b * Hp:(b + 1) * Hp, kh * WC:(kh + 1) * WC] = \
                xb16_ref[b * Hpp + kh:b * Hpp + kh + Hp, :]
    acc1 = jnp.dot(lhs1_ref[...], w1_ref[...],
                   preferred_element_type=jnp.float32)            # (B*Hp, WC)

    # ---- bn1 + relu; zero each image's two halo rows; park in bf16 VMEM ----
    out1 = jnp.maximum(acc1 * s1_ref[...] + b1_ref[...], 0.0)
    row = lax.broadcasted_iota(jnp.int32, (B * Hp, 1), 0)
    interior = functools.reduce(
        jnp.logical_or,
        [jnp.logical_and(row >= b * Hp + 1, row <= b * Hp + Hp - 2)
         for b in range(B)])
    p1_ref[...] = jnp.where(interior, out1, 0.0).astype(jnp.bfloat16)

    # ---- conv2: build (B*H, 3*WC) LHS, then ONE MXU matmul ----
    for b in range(B):
        for kh in range(3):
            lhs2_ref[b * H:(b + 1) * H, kh * WC:(kh + 1) * WC] = \
                p1_ref[b * Hp + kh:b * Hp + kh + H, :]
    acc2 = jnp.dot(lhs2_ref[...], w2_ref[...],
                   preferred_element_type=jnp.float32)            # (B*H, WC)

    # ---- bn2 + residual add (f32) + relu; lane-dense (full 128-lane) stores ----
    out2 = acc2 * s2_ref[...] + b2_ref[...]
    for b in range(B):
        identity = x_ref[b * Hpp + 2:b * Hpp + 2 + H, :]          # (H, WC) f32
        o_ref[b * H:(b + 1) * H, :] = jnp.maximum(
            out2[b * H:(b + 1) * H, :] + identity, 0.0).astype(o_ref.dtype)


def _toeplitz_conv_weight(w_oihw, W):
    """torch OIHW (Cout, Cin, 3, 3) -> (3*W*Cin, W*Cout) bf16 block-Toeplitz.

    big[kh*W*Cin + w_in*Cin + ci, w_out*Cout + co] = w[co, ci, kh, w_in - w_out + 1],
    zero when the kw tap falls outside [0, 3) (the conv's W-boundary zero
    padding is folded into the weight).  The kh taps are stacked along K so a
    single matmul with K = 3*W*Cin performs the whole 3x3 conv."""
    w = jnp.transpose(w_oihw, (2, 3, 1, 0)).astype(jnp.float32)   # (kh, kw, Cin, Cout)
    Cin, Cout = w.shape[2], w.shape[3]
    kw = jnp.arange(3)[:, None, None]
    w_in = jnp.arange(W)[None, :, None]
    w_out = jnp.arange(W)[None, None, :]
    sel = (w_in == w_out + kw - 1).astype(jnp.float32)            # (3, W, W)
    big = jnp.einsum('xio,kxab->kiaob', sel, w)                   # (kh, W, Cin, W, Cout)
    return big.reshape(3 * W * Cin, W * Cout).astype(jnp.bfloat16)


def _fold_bn(gamma, beta, mean, var, eps, W):
    scale = (gamma / jnp.sqrt(var + eps)).astype(jnp.float32)
    shift = (beta - mean * scale).astype(jnp.float32)
    # tile per-channel params across W so they broadcast against (rows, W*C)
    return (jnp.tile(scale, W).reshape(1, -1),
            jnp.tile(shift, W).reshape(1, -1))


def basic_block(x_nchw, w1_oihw, w2_oihw, bn1, bn2, eps=1e-5,
                images_per_step=None):
    """Pallas BasicBlock forward (eval-mode BN). x_nchw: (N, C, H, W) float32."""
    N, C, H, W = x_nchw.shape
    WC = W * C
    Hp, Hpp = H + 2, H + 4

    # How many images share one grid step (raises M per matmul, fewer serial
    # grid steps).  Block rows must stay 8-aligned unless the block spans the
    # whole array.
    if images_per_step is None:
        images_per_step = 1
        for b in (8, 4, 2, 1):
            if N % b == 0 and (N == b or ((b * Hpp) % 8 == 0 and (b * H) % 8 == 0)):
                images_per_step = b
                break
    B = images_per_step
    assert N % B == 0

    # NCHW -> NHWC -> lane-dense (N*(H+4), W*C) row slabs, zero-padded 2 in H.
    x_rows = jnp.transpose(x_nchw, (0, 2, 3, 1)).reshape(N, H, WC).astype(jnp.float32)
    x_rows = jnp.pad(x_rows, ((0, 0), (2, 2), (0, 0))).reshape(N * Hpp, WC)

    w1b = _toeplitz_conv_weight(w1_oihw, W)       # (3*WC, WC) bf16
    w2b = _toeplitz_conv_weight(w2_oihw, W)
    s1, b1 = _fold_bn(*bn1, eps, W)
    s2, b2 = _fold_bn(*bn2, eps, W)

    # Executed (Toeplitz) MXU flops: one K=3*WC dot per conv per image.
    flops = N * 2 * 3 * WC * WC * (Hp + H)
    bytes_accessed = (x_rows.size * 4 + w1b.size * 2 + w2b.size * 2
                      + 4 * WC * 4 + N * H * WC * 4)

    kernel = functools.partial(basic_block_kernel, B, H)

    out_rows = pl.pallas_call(
        kernel,
        out_shape=jax.ShapeDtypeStruct((N * H, WC), jnp.float32),
        grid=(N // B,),
        in_specs=[
            pl.BlockSpec((B * Hpp, WC), lambda n: (n, 0)),
            pl.BlockSpec((3 * WC, WC), lambda n: (0, 0)),
            pl.BlockSpec((3 * WC, WC), lambda n: (0, 0)),
            pl.BlockSpec((1, WC), lambda n: (0, 0)),
            pl.BlockSpec((1, WC), lambda n: (0, 0)),
            pl.BlockSpec((1, WC), lambda n: (0, 0)),
            pl.BlockSpec((1, WC), lambda n: (0, 0)),
        ],
        out_specs=pl.BlockSpec((B * H, WC), lambda n: (n, 0)),
        scratch_shapes=[
            pltpu.VMEM((B * Hpp, WC), jnp.bfloat16),       # one-shot bf16 input
            pltpu.VMEM((B * Hp, 3 * WC), jnp.bfloat16),    # fused conv1 LHS
            pltpu.VMEM((B * Hp, WC), jnp.bfloat16),        # halo'd conv1 output
            pltpu.VMEM((B * H, 3 * WC), jnp.bfloat16),     # fused conv2 LHS
        ],
        compiler_params=pltpu.CompilerParams(
            dimension_semantics=("parallel",),
            vmem_limit_bytes=4 * 1024 * 1024),
        cost_estimate=pl.CostEstimate(flops=flops, transcendentals=0,
                                      bytes_accessed=bytes_accessed),
    )(x_rows, w1b, w2b, s1, b1, s2, b2)

    out = out_rows.reshape(N, H, W, C)
    return jnp.transpose(out, (0, 3, 1, 2))                # back to NCHW


# ---------------- pure-JAX reference (PyTorch eval-mode semantics) ----------------
def _bn_ref(x, gamma, beta, mean, var, eps=1e-5):
    return (x - mean[None, :, None, None]) / jnp.sqrt(var + eps)[None, :, None, None] \
        * gamma[None, :, None, None] + beta[None, :, None, None]


def basic_block_ref(x, w1, w2, bn1, bn2, eps=1e-5):
    dn = ('NCHW', 'OIHW', 'NCHW')
    out = lax.conv_general_dilated(x, w1, (1, 1), ((1, 1), (1, 1)), dimension_numbers=dn)
    out = jnp.maximum(_bn_ref(out, *bn1, eps), 0.0)
    out = lax.conv_general_dilated(out, w2, (1, 1), ((1, 1), (1, 1)), dimension_numbers=dn)
    out = _bn_ref(out, *bn2, eps)
    out = jnp.maximum(out + x, 0.0)
    return out


if __name__ == "__main__":
    key = jax.random.PRNGKey(0)
    N, C, H, W = 2, 8, 16, 16   # inplanes == planes, stride=1, downsample=None
    keys = jax.random.split(key, 11)

    x = jax.random.normal(keys[0], (N, C, H, W), jnp.float32)
    w1 = 0.1 * jax.random.normal(keys[1], (C, C, 3, 3), jnp.float32)
    w2 = 0.1 * jax.random.normal(keys[2], (C, C, 3, 3), jnp.float32)

    bn1 = (1.0 + 0.1 * jax.random.normal(keys[3], (C,), jnp.float32),   # gamma
           0.1 * jax.random.normal(keys[4], (C,), jnp.float32),          # beta
           0.1 * jax.random.normal(keys[5], (C,), jnp.float32),          # running_mean
           0.5 + jax.random.uniform(keys[6], (C,), jnp.float32))         # running_var
    bn2 = (1.0 + 0.1 * jax.random.normal(keys[7], (C,), jnp.float32),
           0.1 * jax.random.normal(keys[8], (C,), jnp.float32),
           0.1 * jax.random.normal(keys[9], (C,), jnp.float32),
           0.5 + jax.random.uniform(keys[10], (C,), jnp.float32))

    y = basic_block(x, w1, w2, bn1, bn2)
    jax.block_until_ready(y)

    y_ref = basic_block_ref(x, w1, w2, bn1, bn2)
    assert y.shape == (N, C, H, W)
    # bf16 MXU operands vs. f32 reference -> relaxed tolerance
    assert jnp.allclose(y, y_ref, atol=5e-2, rtol=5e-2), \
        f"max err {jnp.max(jnp.abs(y - y_ref))}"

    print("KERNEL_OK")
</pallas_src>

<mosaic_0001>
module attributes {stable_mosaic.version = 11 : i64} {
  func.func @basic_block_kernel(%arg0: i32, %arg1: memref<40x128xf32, #tpu.memory_space<vmem>>, %arg2: memref<384x128xbf16, #tpu.memory_space<vmem>>, %arg3: memref<384x128xbf16, #tpu.memory_space<vmem>>, %arg4: memref<1x128xf32, #tpu.memory_space<vmem>>, %arg5: memref<1x128xf32, #tpu.memory_space<vmem>>, %arg6: memref<1x128xf32, #tpu.memory_space<vmem>>, %arg7: memref<1x128xf32, #tpu.memory_space<vmem>>, %arg8: memref<32x128xf32, #tpu.memory_space<vmem>>, %arg9: memref<40x128xbf16, #tpu.memory_space<vmem>>, %arg10: memref<36x384xbf16, #tpu.memory_space<vmem>>, %arg11: memref<36x128xbf16, #tpu.memory_space<vmem>>, %arg12: memref<32x384xbf16, #tpu.memory_space<vmem>>) attributes {dimension_semantics = [#tpu.dimension_semantics<parallel>], iteration_bounds = array<i64: 1>, scalar_prefetch = 0 : i64, scratch_operands = 4 : i64, tpu.core_type = #tpu.core_type<tc>, window_params = [{transform_indices = @transform_0, window_bounds = array<i64: 40, 128>}, {pipeline_mode = #tpu.pipeline_mode<synchronous>, transform_indices = @transform_1, window_bounds = array<i64: 384, 128>}, {pipeline_mode = #tpu.pipeline_mode<synchronous>, transform_indices = @transform_2, window_bounds = array<i64: 384, 128>}, {pipeline_mode = #tpu.pipeline_mode<synchronous>, transform_indices = @transform_3, window_bounds = array<i64: 1, 128>}, {pipeline_mode = #tpu.pipeline_mode<synchronous>, transform_indices = @transform_4, window_bounds = array<i64: 1, 128>}, {pipeline_mode = #tpu.pipeline_mode<synchronous>, transform_indices = @transform_5, window_bounds = array<i64: 1, 128>}, {pipeline_mode = #tpu.pipeline_mode<synchronous>, transform_indices = @transform_6, window_bounds = array<i64: 1, 128>}, {transform_indices = @transform_7, window_bounds = array<i64: 32, 128>}]} {
    %c0 = arith.constant 0 : index
    %c0_0 = arith.constant 0 : index
    %0 = vector.load %arg1[%c0, %c0_0] : memref<40x128xf32, #tpu.memory_space<vmem>>, vector<40x128xf32>
    %1 = arith.truncf %0 : vector<40x128xf32> to vector<40x128xbf16>
    %c0_1 = arith.constant 0 : index
    %c0_2 = arith.constant 0 : index
    %2 = vector.load %arg9[%c0_1, %c0_2] : memref<40x128xbf16, #tpu.memory_space<vmem>>, vector<40x128xbf16>
    tpu.vector_store %arg9[%c0_1, %c0_2], %1 {strides = array<i32>} : memref<40x128xbf16, #tpu.memory_space<vmem>>, vector<40x128xbf16>,
    %c0_3 = arith.constant 0 : index
    %c0_4 = arith.constant 0 : index
    %3 = vector.load %arg9[%c0_3, %c0_4] : memref<40x128xbf16, #tpu.memory_space<vmem>>, vector<18x128xbf16>
    %c0_5 = arith.constant 0 : index
    %c0_6 = arith.constant 0 : index
    %4 = vector.load %arg10[%c0_5, %c0_6] : memref<36x384xbf16, #tpu.memory_space<vmem>>, vector<18x128xbf16>
    tpu.vector_store %arg10[%c0_5, %c0_6], %3 {strides = array<i32>} : memref<36x384xbf16, #tpu.memory_space<vmem>>, vector<18x128xbf16>,
    %c1 = arith.constant 1 : index
    %c0_7 = arith.constant 0 : index
    %5 = vector.load %arg9[%c1, %c0_7] : memref<40x128xbf16, #tpu.memory_space<vmem>>, vector<18x128xbf16>
    %c0_8 = arith.constant 0 : index
    %c128 = arith.constant 128 : index
    %6 = vector.load %arg10[%c0_8, %c128] : memref<36x384xbf16, #tpu.memory_space<vmem>>, vector<18x128xbf16>
    tpu.vector_store %arg10[%c0_8, %c128], %5 {strides = array<i32>} : memref<36x384xbf16, #tpu.memory_space<vmem>>, vector<18x128xbf16>,
    %c2 = arith.constant 2 : index
    %c0_9 = arith.constant 0 : index
    %7 = vector.load %arg9[%c2, %c0_9] : memref<40x128xbf16, #tpu.memory_space<vmem>>, vector<18x128xbf16>
    %c0_10 = arith.constant 0 : index
    %c256 = arith.constant 256 : index
    %8 = vector.load %arg10[%c0_10, %c256] : memref<36x384xbf16, #tpu.memory_space<vmem>>, vector<18x128xbf16>
    tpu.vector_store %arg10[%c0_10, %c256], %7 {strides = array<i32>} : memref<36x384xbf16, #tpu.memory_space<vmem>>, vector<18x128xbf16>,
    %c20 = arith.constant 20 : index
    %c0_11 = arith.constant 0 : index
    %9 = vector.load %arg9[%c20, %c0_11] : memref<40x128xbf16, #tpu.memory_space<vmem>>, vector<18x128xbf16>
    %c18 = arith.constant 18 : index
    %c0_12 = arith.constant 0 : index
    %10 = vector.load %arg10[%c18, %c0_12] : memref<36x384xbf16, #tpu.memory_space<vmem>>, vector<18x128xbf16>
    tpu.vector_store %arg10[%c18, %c0_12], %9 {strides = array<i32>} : memref<36x384xbf16, #tpu.memory_space<vmem>>, vector<18x128xbf16>,
    %c21 = arith.constant 21 : index
    %c0_13 = arith.constant 0 : index
    %11 = vector.load %arg9[%c21, %c0_13] : memref<40x128xbf16, #tpu.memory_space<vmem>>, vector<18x128xbf16>
    %c18_14 = arith.constant 18 : index
    %c128_15 = arith.constant 128 : index
    %12 = vector.load %arg10[%c18_14, %c128_15] : memref<36x384xbf16, #tpu.memory_space<vmem>>, vector<18x128xbf16>
    tpu.vector_store %arg10[%c18_14, %c128_15], %11 {strides = array<i32>} : memref<36x384xbf16, #tpu.memory_space<vmem>>, vector<18x128xbf16>,
    %c22 = arith.constant 22 : index
    %c0_16 = arith.constant 0 : index
    %13 = vector.load %arg9[%c22, %c0_16] : memref<40x128xbf16, #tpu.memory_space<vmem>>, vector<18x128xbf16>
    %c18_17 = arith.constant 18 : index
    %c256_18 = arith.constant 256 : index
    %14 = vector.load %arg10[%c18_17, %c256_18] : memref<36x384xbf16, #tpu.memory_space<vmem>>, vector<18x128xbf16>
    tpu.vector_store %arg10[%c18_17, %c256_18], %13 {strides = array<i32>} : memref<36x384xbf16, #tpu.memory_space<vmem>>, vector<18x128xbf16>,
    %c0_19 = arith.constant 0 : index
    %c0_20 = arith.constant 0 : index
    %15 = vector.load %arg10[%c0_19, %c0_20] : memref<36x384xbf16, #tpu.memory_space<vmem>>, vector<36x384xbf16>
    %c0_21 = arith.constant 0 : index
    %c0_22 = arith.constant 0 : index
    %16 = vector.load %arg2[%c0_21, %c0_22] : memref<384x128xbf16, #tpu.memory_space<vmem>>, vector<384x128xbf16>
    %cst = arith.constant dense<0.000000e+00> : vector<36x128xf32>
    %17 = tpu.matmul %15, %16, %cst {dimension_numbers = #tpu.dot_dimension_numbers<[1], [0], [0], [1], [0, 0, 1, 1], [], []>} : vector<36x384xbf16>, vector<384x128xbf16>, vector<36x128xf32> -> vector<36x128xf32>
    %c0_23 = arith.constant 0 : index
    %c0_24 = arith.constant 0 : index
    %18 = vector.load %arg4[%c0_23, %c0_24] : memref<1x128xf32, #tpu.memory_space<vmem>>, vector<1x128xf32>
    %19 = vector.broadcast %18 : vector<1x128xf32> to vector<36x128xf32>
    %20 = arith.mulf %17, %19 : vector<36x128xf32>
    %c0_25 = arith.constant 0 : index
    %c0_26 = arith.constant 0 : index
    %21 = vector.load %arg5[%c0_25, %c0_26] : memref<1x128xf32, #tpu.memory_space<vmem>>, vector<1x128xf32>
    %22 = vector.broadcast %21 : vector<1x128xf32> to vector<36x128xf32>
    %23 = arith.addf %20, %22 : vector<36x128xf32>
    %cst_27 = arith.constant 0.000000e+00 : f32
    %24 = vector.broadcast %cst_27 : f32 to vector<36x128xf32>
    %25 = arith.maximumf %23, %24 : vector<36x128xf32>
    %26 = tpu.iota {dimensions = array<i32: 0>} : vector<36x1xi32>
    %c1_i32 = arith.constant 1 : i32
    %27 = vector.broadcast %c1_i32 : i32 to vector<36x1xi32>
    %28 = arith.cmpi sge, %26, %27 : vector<36x1xi32>
    %c16_i32 = arith.constant 16 : i32
    %29 = vector.broadcast %c16_i32 : i32 to vector<36x1xi32>
    %30 = arith.cmpi sle, %26, %29 : vector<36x1xi32>
    %31 = arith.andi %28, %30 : vector<36x1xi1>
    %c19_i32 = arith.constant 19 : i32
    %32 = vector.broadcast %c19_i32 : i32 to vector<36x1xi32>
    %33 = arith.cmpi sge, %26, %32 : vector<36x1xi32>
    %c34_i32 = arith.constant 34 : i32
    %34 = vector.broadcast %c34_i32 : i32 to vector<36x1xi32>
    %35 = arith.cmpi sle, %26, %34 : vector<36x1xi32>
    %36 = arith.andi %33, %35 : vector<36x1xi1>
    %37 = arith.ori %31, %36 : vector<36x1xi1>
    %cst_28 = arith.constant 0.000000e+00 : f32
    %38 = vector.shape_cast %37 : vector<36x1xi1> to vector<36x1xi1>
    %39 = vector.broadcast %38 : vector<36x1xi1> to vector<36x128xi1>
    %40 = vector.broadcast %cst_28 : f32 to vector<36x128xf32>
    %41 = arith.select %39, %25, %40 : vector<36x128xi1>, vector<36x128xf32>
    %42 = arith.truncf %41 : vector<36x128xf32> to vector<36x128xbf16>
    %c0_29 = arith.constant 0 : index
    %c0_30 = arith.constant 0 : index
    %43 = vector.load %arg11[%c0_29, %c0_30] : memref<36x128xbf16, #tpu.memory_space<vmem>>, vector<36x128xbf16>
    tpu.vector_store %arg11[%c0_29, %c0_30], %42 {strides = array<i32>} : memref<36x128xbf16, #tpu.memory_space<vmem>>, vector<36x128xbf16>,
    %c0_31 = arith.constant 0 : index
    %c0_32 = arith.constant 0 : index
    %44 = vector.load %arg11[%c0_31, %c0_32] : memref<36x128xbf16, #tpu.memory_space<vmem>>, vector<16x128xbf16>
    %c0_33 = arith.constant 0 : index
    %c0_34 = arith.constant 0 : index
    %45 = vector.load %arg12[%c0_33, %c0_34] : memref<32x384xbf16, #tpu.memory_space<vmem>>, vector<16x128xbf16>
    tpu.vector_store %arg12[%c0_33, %c0_34], %44 {strides = array<i32>} : memref<32x384xbf16, #tpu.memory_space<vmem>>, vector<16x128xbf16>,
    %c1_35 = arith.constant 1 : index
    %c0_36 = arith.constant 0 : index
    %46 = vector.load %arg11[%c1_35, %c0_36] : memref<36x128xbf16, #tpu.memory_space<vmem>>, vector<16x128xbf16>
    %c0_37 = arith.constant 0 : index
    %c128_38 = arith.constant 128 : index
    %47 = vector.load %arg12[%c0_37, %c128_38] : memref<32x384xbf16, #tpu.memory_space<vmem>>, vector<16x128xbf16>
    tpu.vector_store %arg12[%c0_37, %c128_38], %46 {strides = array<i32>} : memref<32x384xbf16, #tpu.memory_space<vmem>>, vector<16x128xbf16>,
    %c2_39 = arith.constant 2 : index
    %c0_40 = arith.constant 0 : index
    %48 = vector.load %arg11[%c2_39, %c0_40] : memref<36x128xbf16, #tpu.memory_space<vmem>>, vector<16x128xbf16>
    %c0_41 = arith.constant 0 : index
    %c256_42 = arith.constant 256 : index
    %49 = vector.load %arg12[%c0_41, %c256_42] : memref<32x384xbf16, #tpu.memory_space<vmem>>, vector<16x128xbf16>
    tpu.vector_store %arg12[%c0_41, %c256_42], %48 {strides = array<i32>} : memref<32x384xbf16, #tpu.memory_space<vmem>>, vector<16x128xbf16>,
    %c18_43 = arith.constant 18 : index
    %c0_44 = arith.constant 0 : index
    %50 = vector.load %arg11[%c18_43, %c0_44] : memref<36x128xbf16, #tpu.memory_space<vmem>>, vector<16x128xbf16>
    %c16 = arith.constant 16 : index
    %c0_45 = arith.constant 0 : index
    %51 = vector.load %arg12[%c16, %c0_45] : memref<32x384xbf16, #tpu.memory_space<vmem>>, vector<16x128xbf16>
    tpu.vector_store %arg12[%c16, %c0_45], %50 {strides = array<i32>} : memref<32x384xbf16, #tpu.memory_space<vmem>>, vector<16x128xbf16>,
    %c19 = arith.constant 19 : index
    %c0_46 = arith.constant 0 : index
    %52 = vector.load %arg11[%c19, %c0_46] : memref<36x128xbf16, #tpu.memory_space<vmem>>, vector<16x128xbf16>
    %c16_47 = arith.constant 16 : index
    %c128_48 = arith.constant 128 : index
    %53 = vector.load %arg12[%c16_47, %c128_48] : memref<32x384xbf16, #tpu.memory_space<vmem>>, vector<16x128xbf16>
    tpu.vector_store %arg12[%c16_47, %c128_48], %52 {strides = array<i32>} : memref<32x384xbf16, #tpu.memory_space<vmem>>, vector<16x128xbf16>,
    %c20_49 = arith.constant 20 : index
    %c0_50 = arith.constant 0 : index
    %54 = vector.load %arg11[%c20_49, %c0_50] : memref<36x128xbf16, #tpu.memory_space<vmem>>, vector<16x128xbf16>
    %c16_51 = arith.constant 16 : index
    %c256_52 = arith.constant 256 : index
    %55 = vector.load %arg12[%c16_51, %c256_52] : memref<32x384xbf16, #tpu.memory_space<vmem>>, vector<16x128xbf16>
    tpu.vector_store %arg12[%c16_51, %c256_52], %54 {strides = array<i32>} : memref<32x384xbf16, #tpu.memory_space<vmem>>, vector<16x128xbf16>,
    %c0_53 = arith.constant 0 : index
    %c0_54 = arith.constant 0 : index
    %56 = vector.load %arg12[%c0_53, %c0_54] : memref<32x384xbf16, #tpu.memory_space<vmem>>, vector<32x384xbf16>
    %c0_55 = arith.constant 0 : index
    %c0_56 = arith.constant 0 : index
    %57 = vector.load %arg3[%c0_55, %c0_56] : memref<384x128xbf16, #tpu.memory_space<vmem>>, vector<384x128xbf16>
    %cst_57 = arith.constant dense<0.000000e+00> : vector<32x128xf32>
    %58 = tpu.matmul %56, %57, %cst_57 {dimension_numbers = #tpu.dot_dimension_numbers<[1], [0], [0], [1], [0, 0, 1, 1], [], []>} : vector<32x384xbf16>, vector<384x128xbf16>, vector<32x128xf32> -> vector<32x128xf32>
    %c0_58 = arith.constant 0 : index
    %c0_59 = arith.constant 0 : index
    %59 = vector.load %arg6[%c0_58, %c0_59] : memref<1x128xf32, #tpu.memory_space<vmem>>, vector<1x128xf32>
    %60 = vector.broadcast %59 : vector<1x128xf32> to vector<32x128xf32>
    %61 = arith.mulf %58, %60 : vector<32x128xf32>
    %c0_60 = arith.constant 0 : index
    %c0_61 = arith.constant 0 : index
    %62 = vector.load %arg7[%c0_60, %c0_61] : memref<1x128xf32, #tpu.memory_space<vmem>>, vector<1x128xf32>
    %63 = vector.broadcast %62 : vector<1x128xf32> to vector<32x128xf32>
    %64 = arith.addf %61, %63 : vector<32x128xf32>
    %c2_62 = arith.constant 2 : index
    %c0_63 = arith.constant 0 : index
    %65 = vector.load %arg1[%c2_62, %c0_63] : memref<40x128xf32, #tpu.memory_space<vmem>>, vector<16x128xf32>
    %66 = vector.extract_strided_slice %64 {offsets = [0, 0], sizes = [16, 128], strides = [1, 1]} : vector<32x128xf32> to vector<16x128xf32>
    %67 = arith.addf %66, %65 : vector<16x128xf32>
    %cst_64 = arith.constant 0.000000e+00 : f32
    %68 = vector.broadcast %cst_64 : f32 to vector<16x128xf32>
    %69 = arith.maximumf %67, %68 : vector<16x128xf32>
    %c0_65 = arith.constant 0 : index
    %c0_66 = arith.constant 0 : index
    %70 = vector.load %arg8[%c0_65, %c0_66] : memref<32x128xf32, #tpu.memory_space<vmem>>, vector<16x128xf32>
    tpu.vector_store %arg8[%c0_65, %c0_66], %69 {strides = array<i32>} : memref<32x128xf32, #tpu.memory_space<vmem>>, vector<16x128xf32>,
    %c22_67 = arith.constant 22 : index
    %c0_68 = arith.constant 0 : index
    %71 = vector.load %arg1[%c22_67, %c0_68] : memref<40x128xf32, #tpu.memory_space<vmem>>, vector<16x128xf32>
    %72 = vector.extract_strided_slice %64 {offsets = [16, 0], sizes = [16, 128], strides = [1, 1]} : vector<32x128xf32> to vector<16x128xf32>
    %73 = arith.addf %72, %71 : vector<16x128xf32>
    %cst_69 = arith.constant 0.000000e+00 : f32
    %74 = vector.broadcast %cst_69 : f32 to vector<16x128xf32>
    %75 = arith.maximumf %73, %74 : vector<16x128xf32>
    %c16_70 = arith.constant 16 : index
    %c0_71 = arith.constant 0 : index
    %76 = vector.load %arg8[%c16_70, %c0_71] : memref<32x128xf32, #tpu.memory_space<vmem>>, vector<16x128xf32>
    tpu.vector_store %arg8[%c16_70, %c0_71], %75 {strides = array<i32>} : memref<32x128xf32, #tpu.memory_space<vmem>>, vector<16x128xf32>,
    return
  }
  func.func @transform_0(%arg0: i32) -> (i32, i32) {
    %c0_i32 = arith.constant 0 : i32
    %c0_i32_0 = arith.constant 0 : i32
    return %arg0, %c0_i32 : i32, i32
  }
  func.func @transform_1(%arg0: i32) -> (i32, i32) {
    %c0_i32 = arith.constant 0 : i32
    %c0_i32_0 = arith.constant 0 : i32
    %c0_i32_1 = arith.constant 0 : i32
    return %c0_i32, %c0_i32_0 : i32, i32
  }
  func.func @transform_2(%arg0: i32) -> (i32, i32) {
    %c0_i32 = arith.constant 0 : i32
    %c0_i32_0 = arith.constant 0 : i32
    %c0_i32_1 = arith.constant 0 : i32
    return %c0_i32, %c0_i32_0 : i32, i32
  }
  func.func @transform_3(%arg0: i32) -> (i32, i32) {
    %c0_i32 = arith.constant 0 : i32
    %c0_i32_0 = arith.constant 0 : i32
    %c0_i32_1 = arith.constant 0 : i32
    return %c0_i32, %c0_i32_0 : i32, i32
  }
  func.func @transform_4(%arg0: i32) -> (i32, i32) {
    %c0_i32 = arith.constant 0 : i32
    %c0_i32_0 = arith.constant 0 : i32
    %c0_i32_1 = arith.constant 0 : i32
    return %c0_i32, %c0_i32_0 : i32, i32
  }
  func.func @transform_5(%arg0: i32) -> (i32, i32) {
    %c0_i32 = arith.constant 0 : i32
    %c0_i32_0 = arith.constant 0 : i32
    %c0_i32_1 = arith.constant 0 : i32
    return %c0_i32, %c0_i32_0 : i32, i32
  }
  func.func @transform_6(%arg0: i32) -> (i32, i32) {
    %c0_i32 = arith.constant 0 : i32
    %c0_i32_0 = arith.constant 0 : i32
    %c0_i32_1 = arith.constant 0 : i32
    return %c0_i32, %c0_i32_0 : i32, i32
  }
  func.func @transform_7(%arg0: i32) -> (i32, i32) {
    %c0_i32 = arith.constant 0 : i32
    %c0_i32_0 = arith.constant 0 : i32
    return %arg0, %c0_i32 : i32, i32
  }
}

</mosaic_0001>

<bundles_post_ra>
// kernel: tpu_custom_call.1
= control target key start
LH: loop header
LB: loop body
LE: loop exit
PB: predicated region body
PF: predicated region fallthrough
CT: control target
= control target key end

     0   :  { %12 = vsyncpa [#allocation7], 0  ;;  %s1796_s0 = inlined_call_operand.hbm [shape: f32[40,128], index: 0, kind: input, shape index: {}]   ;;  %s1797_s1 = inlined_call_operand.hbm [shape: bf16[384,128], index: 1, kind: input, shape index: {}]   ;;  %s1798_s2 = inlined_call_operand.hbm [shape: bf16[384,128], index: 2, kind: input, shape index: {}]   ;;  %s1799_s3 = inlined_call_operand.vmem [shape: f32[1,128], index: 3, kind: input, shape index: {}]   ;;  %s1800_s4 = inlined_call_operand.vmem [shape: f32[1,128], index: 4, kind: input, shape index: {}]   ;;  %s1801_s5 = inlined_call_operand.vmem [shape: f32[1,128], index: 5, kind: input, shape index: {}]   ;;  %s1802_s6 = inlined_call_operand.vmem [shape: f32[1,128], index: 6, kind: input, shape index: {}]   ;;  %s1803_s7 = inlined_call_operand.hbm [shape: f32[32,128], index: 7, kind: output, shape index: {}]  }
   0x1   :  { %13 = vsyncpa [#allocation10], 0 }
   0x2   :  { %14 = vsyncpa [#allocation8], 0  ;;  %s1637_s24 = smov [#allocation9]  }
   0x3   :  { %s32_s25 = sshll.u32 %s1637_s24, 4  ;;  %s33_s25 = int_to_ptr.vmem [resolvable:$true] %s32_s25 }
   0x4   :  { %s1559_s26 = scalar_lea.vmem %s33_s25, 3072  ;;  %p1564_p1 = scmp.lt.s32.totalorder %s33_s25, %s33_s25 }
   0x5   :  { %p1560_p0 = scmp.ne.s32.totalorder %s33_s25, %s1559_s26  ;;  %p1565_p2 = scmp.lt.s32.totalorder %s1559_s26, %s1559_s26 }
   0x7   :  { %p1566_p3 = por %p1565_p2, %p1564_p1 }
   0x9   :  { %p1567_p4 = pnand %p1566_p3, %p1560_p0 }
   0xb   :  { %1570 = shalt.err (!%p1567_p4)
}
   0xc   :  { %s1638_s27 = smov 64   ;;  %s1639_s28 = smov 4  }
   0xd   :  { %38 = dma.hbm_to_vmem [thread:$0]  %s1797_s1, 3072, %s33_s25, [#allocation10], %s1638_s27, %s1638_s27, %s1639_s28  }
   0xe   :  { %s1640_s8 = smov [#allocation6]  }
   0xf   :  { %s20_s9 = sshll.u32 %s1640_s8, 4  ;;  %s21_s9 = int_to_ptr.vmem [resolvable:$true] %s20_s9 }
  0x10   :  { %s1579_s10 = scalar_lea.vmem %s21_s9, 640  ;;  %p1584_p6 = scmp.lt.s32.totalorder %s21_s9, %s21_s9 }
  0x11   :  { %p1580_p5 = scmp.ne.s32.totalorder %s21_s9, %s1579_s10  ;;  %p1585_p7 = scmp.lt.s32.totalorder %s1579_s10, %s1579_s10 }
  0x13   :  { %p1586_p8 = por %p1585_p7, %p1584_p6 }
  0x15   :  { %p1587_p9 = pnand %p1586_p8, %p1580_p5 }
  0x17   :  { %1590 = shalt.err (!%p1587_p9)
}
  0x18   :  { %s1641_s11 = smov 128   ;;  %s1642_s12 = smov 8  }
  0x19   :  { %26 = dma.hbm_to_vmem [thread:$0]  %s1796_s0, 640, %s21_s9, [#allocation7], %s1641_s11, %s1641_s11, %s1642_s12  }
  0x1a   :  { %s1643_s1 = smov [#allocation11]  }
  0x1b   :  { %s44_s15 = sshll.u32 %s1643_s1, 4  ;;  %s45_s15 = int_to_ptr.vmem [resolvable:$true] %s44_s15 }
  0x1c   :  { %s1599_s16 = scalar_lea.vmem %s45_s15, 3072  ;;  %p1604_p11 = scmp.lt.s32.totalorder %s45_s15, %s45_s15 }
  0x1d   :  { %p1600_p10 = scmp.ne.s32.totalorder %s45_s15, %s1599_s16  ;;  %p1605_p12 = scmp.lt.s32.totalorder %s1599_s16, %s1599_s16 }
  0x1f   :  { %p1606_p13 = por %p1605_p12, %p1604_p11 }
  0x21   :  { %p1607_p0 = pnand %p1606_p13, %p1600_p10 }
  0x23   :  { %1610 = shalt.err (!%p1607_p0)
}
  0x24   :  { %50 = dma.hbm_to_vmem [thread:$0]  %s1798_s2, 3072, %s45_s15, [#allocation10], %s1638_s27, %s1638_s27, %s1639_s28  }
  0x25   :  { %1631 = dma.done.wait [#allocation7], 640  }
  0x26   :  { %1632 = vsyncadd [#allocation7], 4294966656 }
  0x27   :  { %1633 = dma.done.wait [#allocation10], 6144  }
  0x28   :  { %1634 = vsyncadd [#allocation10], 4294961152  ;;  %v1644_v0 = vmov 0.0   ;;  %vm1645_vm0 = vmmov 0   ;;  %v1485_v1 = vld [vmem:[#allocation9 + $0x78] sm:$0xff]   ;;  %v1488_v4 = vld [vmem:[#allocation9 + $0x70] sm:$0xff]  }
  0x29   :  { %1427 = vmatprep.subr.bf16.mxu1 %v1644_v0  ;;  %1443 = vmatprep.mubr.msk.bf16.mxu1 %vm1645_vm0, %v1644_v0  ;;  %v1486_v2 = vld [vmem:[#allocation9 + $0xb8] sm:$0xff]   ;;  %v1489_v5 = vld [vmem:[#allocation9 + $0xb0] sm:$0xff]   ;;  %v1491_v7 = vld [vmem:[#allocation9 + $0x68] sm:$0xff]   ;;  %vm153_vm1 = vcmask 1042432   ;;  %vm154_vm2 = vcmask 1046532   ;;  %vm237_vm5 = vcmask 1041408  }
  0x2a   :  { %1344 = vmatprep.subr.bf16.mxu0 %v1485_v1  ;;  %v1487_v3 = vld [vmem:[#allocation9 + $0x38] sm:$0xff]   ;;  %1428 = vmatpush3.bf16.msra.mxu1 %v1486_v2  ;;  %v1490_v6 = vld [vmem:[#allocation9 + $0x30] sm:$0xff]   ;;  %v1492_v8 = vld [vmem:[#allocation9 + $0xa8] sm:$0xff]   ;;  %vm109_vm3 = vsmask.f32 3328  ;;  %vm238_vm10 = vcmask 1045508  }
  0x2b   :  { %1345 = vmatpush3.bf16.msra.mxu0 %v1487_v3  ;;  %1429 = vmatprep.subr.bf16.mxu1 %v1644_v0  ;;  %v1493_v9 = vld [vmem:[#allocation9 + $0x28] sm:$0xff]   ;;  %v1494_v10 = vld [vmem:[#allocation9 + $0x60] sm:$0xff]   ;;  %v1497_v13 = vld [vmem:[#allocation9 + $0x58] sm:$0xff]   ;;  %vm110_vm4 = vsmask.f32 7440 }
  0x2c   :  { %1346 = vmatprep.subr.bf16.mxu0 %v1488_v4  ;;  %v1495_v11 = vld [vmem:[#allocation9 + $0xa0] sm:$0xff]   ;;  %v1498_v14 = vld [vmem:[#allocation9 + $0x98] sm:$0xff]   ;;  %v1500_v16 = vld [vmem:[#allocation9 + $0x50] sm:$0xff]   ;;  %vm193_vm6 = vsmask.f32 2304 }
  0x2d   :  { %v1496_v12 = vld [vmem:[#allocation9 + $0x20] sm:$0xff]   ;;  %v1499_v15 = vld [vmem:[#allocation9 + $0x18] sm:$0xff]   ;;  %v1501_v17 = vld [vmem:[#allocation9 + $0x90] sm:$0xff]   ;;  %vm194_vm7 = vsmask.f32 6416 }
  0x2e   :  { %1430 = vmatpush3.bf16.msra.mxu1 %v1489_v5  ;;  %v1502_v18 = vld [vmem:[#allocation9 + $0x10] sm:$0xff]   ;;  %v1503_v19 = vld [vmem:[#allocation9 + $0x48] sm:$0xff]   ;;  %v1506_v22 = vld [vmem:[#allocation9 + $0x40] sm:$0xff]  }
  0x2f   :  { %1347 = vmatpush3.bf16.msra.mxu0 %v1490_v6  ;;  %1431 = vmatprep.subr.bf16.mxu1 %v1644_v0  ;;  %v1504_v20 = vld [vmem:[#allocation9 + $0x88] sm:$0xff]   ;;  %v69_v23 = vld [vmem:[#allocation6] sm:$0xff]  ;;  %v70_v24 = vld [vmem:[#allocation6 + $0x8] sm:$0xff] }
  0x30   :  { %1348 = vmatprep.subr.bf16.mxu0 %v1491_v7  ;;  %v1505_v21 = vld [vmem:[#allocation9 + $0x8] sm:$0xff]   ;;  %v1507_v26 = vld [vmem:[#allocation9 + $0x80] sm:$0xff]   ;;  %v72_v27 = vld [vmem:[#allocation6 + $0x18] sm:$0xff]  ;;  %v1325_v28 = vpack.c.bf16 %v70_v24, %v69_v23 }
  0x31   :  { %v71_v25 = vld [vmem:[#allocation6 + $0x10] sm:$0xff]  ;;  %v73_v29 = vld [vmem:[#allocation6 + $0x20] sm:$0xff]  ;;  %v1508_v30 = vld [vmem:[#allocation9] sm:$0xff]  }
  0x32   :  { %1432 = vmatpush3.bf16.msra.mxu1 %v1492_v8  ;;  %v1330_v31 = vpack.c.bf16 %v72_v27, %v71_v25  ;;  %v1316_v32 = vpack.c.bf16 %v73_v29, %v73_v29  ;;  %1326 = vst [vmem:[#allocation2] sm:$0xff] %v1325_v28   ;;  %vm1711_vm8 = vmor %vm153_vm1, %vm154_vm2 }
  0x33   :  { %1349 = vmatpush3.bf16.msra.mxu0 %v1493_v9  ;;  %1433 = vmatprep.subr.bf16.mxu1 %v1644_v0  ;;  %vm1717_vm9 = vmor %vm109_vm3, %vm110_vm4 }
  0x34   :  { %1350 = vmatprep.subr.bf16.mxu0 %v1494_v10  ;;  %1342 = vst [vmem:[#allocation2 + $0x8] sm:$0xff] %v1330_v31   ;;  %99 = vst [vmem:[#allocation2 + $0x10] sm:$0xf] %v1316_v32 }
  0x35   :  { %vm1735_vm11 = vmor %vm237_vm5, %vm238_vm10 }
  0x36   :  { %1434 = vmatpush3.bf16.msra.mxu1 %v1495_v11  ;;  %vm1741_vm12 = vmor %vm193_vm6, %vm194_vm7 }
  0x37   :  { %1351 = vmatpush3.bf16.msra.mxu0 %v1496_v12  ;;  %1435 = vmatprep.subr.bf16.mxu1 %v1644_v0 }
  0x38   :  { %1352 = vmatprep.subr.bf16.mxu0 %v1497_v13 }
  0x39   :  { %v100_v33 = vld [vmem:[#allocation2] sm:$0xf]  ;;  %v101_v34 = vld [vmem:[#allocation2 + $0x4] sm:$0xf] }
  0x3a   :  { %1436 = vmatpush3.bf16.msra.mxu1 %v1498_v14  ;;  %v106_v35 = vld [vmem:[#allocation2] sm:$0xf]  ;;  %103 = vst [vmem:[#allocation3] sm:$0xf] %v100_v33  ;;  %104 = vst [vmem:[#allocation3 + $0xc] sm:$0xf] %v101_v34 }
  0x3b   :  { %1353 = vmatpush3.bf16.msra.mxu0 %v1499_v15  ;;  %1437 = vmatprep.subr.bf16.mxu1 %v1644_v0  ;;  %v107_v36 = vld [vmem:[#allocation2 + $0x4] sm:$0xf]  ;;  %v108_v37 = vld [vmem:[#allocation2 + $0x8] sm:$0x3]  ;;  %v113_v38 = vshrl.u32 %v106_v35, 16  ;;  %v116_v39 = vshll.u32 %v106_v35, 16 }
  0x3c   :  { %1354 = vmatprep.subr.bf16.mxu0 %v1500_v16  ;;  %v122_v40 = vshll.u32 %v107_v36, 16  ;;  %v126_v41 = vshrl.u32 %v107_v36, 16  ;;  %v132_v42 = vshll.u32 %v108_v37, 16  ;;  %v136_v43 = vshrl.u32 %v108_v37, 16  ;;  %v147_v44 = vld [vmem:[#allocation2] sm:$0xe] }
  0x3d   :  { %v115_v45 = vrot.slane %v113_v38, 4  ;;  %v118_v46 = vrot.slane %v116_v39, 5  ;;  %v148_v47 = vld [vmem:[#allocation2 + $0x4] sm:$0xf]  ;;  %v149_v48 = vld [vmem:[#allocation2 + $0x8] sm:$0x3] }
  0x3e   :  { %1438 = vmatpush3.bf16.msra.mxu1 %v1501_v17  ;;  %v124_v49 = vrot.slane %v122_v40, 5  ;;  %v128_v50 = vrot.slane %v126_v41, 4  ;;  %v134_v51 = vrot.slane %v132_v42, 5  ;;  %v1234_v53 = vrot.slane %v147_v44, 9  ;;  %v102_v54 = vld [vmem:[#allocation2 + $0x8] sm:$0x1] }
  0x3f   :  { %1355 = vmatpush3.bf16.msra.mxu0 %v1502_v18  ;;  %1439 = vmatprep.subr.bf16.mxu1 %v1644_v0  ;;  %v119_v55 = vor.u32 %v118_v46, %v115_v45  ;;  %v158_v56 = vrot.slane %v148_v47, 5  ;;  %v161_v57 = vrot.slane %v149_v48, 5  ;;  %105 = vst [vmem:[#allocation3 + $0x18] sm:$0x1] %v102_v54  ;;  %v138_v58 = vrot.slane %v136_v43, 4 }
  0x40   :  { %1356 = vmatprep.subr.bf16.mxu0 %v1503_v19  ;;  %v170_v59 = vld [vmem:[#allocation2 + $0x8] sm:$0xc]  ;;  %v129_v61 = vor.u32 %v128_v50, %v124_v49  ;;  %v171_v62 = vld [vmem:[#allocation2 + $0xc] sm:$0xf]  ;;  %v172_v63 = vld [vmem:[#allocation2 + $0x10] sm:$0x7] }
  0x41   :  { %v1235_v1 = vrot.slane %v170_v59, 9  ;;  %v120_v2 = vrot.slane %v119_v55, 4  ;;  %v159_v3 = vsel %vm1711_vm8, %v1234_v53, %v158_v56  ;;  %v160_v4 = vrot.slane %v158_v56, 4  ;;  %v190_v6 = vld [vmem:[#allocation2 + $0x8] sm:$0xc] }
  0x42   :  { %1440 = vmatpush3.bf16.msra.mxu1 %v1504_v20  ;;  %v139_v5 = vor.u32 %v138_v58, %v134_v51  ;;  %v191_v7 = vld [vmem:[#allocation2 + $0xc] sm:$0xf]  ;;  %v130_v8 = vrot.slane %v129_v61, 4  ;;  %167 = vst [vmem:[#allocation3 + $0x8] sm:$0xf] %v159_v3  ;;  %v178_v9 = vrot.slane %v171_v62, 5 }
  0x43   :  { %1357 = vmatpush3.bf16.msra.mxu0 %v1505_v21  ;;  %1441 = vmatprep.subr.bf16.mxu1 %v1644_v0  ;;  %v181_v10 = vrot.slane %v172_v63, 5  ;;  %v192_v11 = vld [vmem:[#allocation2 + $0x10] sm:$0xf]  ;;  %v197_v12 = vshrl.u32 %v190_v6, 16  ;;  %v125_v13 = vsel %vm1717_vm9, %v120_v2, %v124_v49  ;;  %v162_v14 = vsel %vm1711_vm8, %v160_v4, %v161_v57  ;;  %v231_v17 = vld [vmem:[#allocation2 + $0x8] sm:$0x8] }
  0x44   :  { %1358 = vmatprep.subr.bf16.mxu0 %v1506_v22  ;;  %v140_v15 = vrot.slane %v139_v5, 4  ;;  %v200_v16 = vshll.u32 %v190_v6, 16  ;;  %v232_v18 = vld [vmem:[#allocation2 + $0xc] sm:$0xf]  ;;  %v135_v19 = vsel %vm1717_vm9, %v130_v8, %v134_v51  ;;  %144 = vst [vmem:[#allocation3 + $0x4] sm:$0xf] %v125_v13  ;;  %v179_v20 = vsel %vm1711_vm8, %v1235_v1, %v178_v9 }
  0x45   :  { %168 = vst [vmem:[#allocation3 + $0x14] sm:$0xf] %v162_v14  ;;  %v180_v21 = vrot.slane %v178_v9, 4  ;;  %v199_v22 = vrot.slane %v197_v12, 5  ;;  %v233_v23 = vld [vmem:[#allocation2 + $0x10] sm:$0xf] }
  0x46   :  { %1442 = vmatpush3.bf16.msra.mxu1 %v1507_v26  ;;  %145 = vst [vmem:[#allocation3 + $0x10] sm:$0xf] %v135_v19  ;;  %146 = vst [vmem:[#allocation3 + $0x1c] sm:$0x1] %v140_v15  ;;  %v202_v24 = vrot.slane %v200_v16, 6  ;;  %v206_v25 = vshrl.u32 %v191_v7, 16 }
  0x47   :  { %1359 = vmatpush3.bf16.msra.mxu0 %v1508_v30  ;;  %187 = vst [vmem:[#allocation3 + $0x18] sm:$0xe] %v179_v20  ;;  %v209_v26 = vshll.u32 %v191_v7, 16  ;;  %v216_v27 = vshrl.u32 %v192_v11, 16  ;;  %v182_v28 = vsel %vm1711_vm8, %v180_v21, %v181_v10  ;;  %v219_v29 = vshll.u32 %v192_v11, 16  ;;  %v1519_v4 = vld [vmem:[#allocation11 + $0x78] sm:$0xff]  }
  0x48   :  { %v163_v30 = vrot.slane %v161_v57, 4  ;;  %v1236_v31 = vrot.slane %v231_v17, 10  ;;  %188 = vst [vmem:[#allocation3 + $0x24] sm:$0xf] %v182_v28  ;;  %v203_v32 = vor.u32 %v202_v24, %v199_v22  ;;  %v208_v33 = vrot.slane %v206_v25, 5  ;;  %v1520_v5 = vld [vmem:[#allocation11 + $0x38] sm:$0xff]   ;;  %1389 = vmatprep.subr.bf16.mxu0 %v1519_v4 }
  0x49   :  { %v211_v34 = vrot.slane %v209_v26, 6  ;;  %v218_v35 = vrot.slane %v216_v27, 5  ;;  %v221_v38 = vrot.slane %v219_v29, 6  ;;  %v242_v39 = vrot.slane %v232_v18, 6  ;;  %v1509_v51 = vld [vmem:[#allocation3] ss:$12 sps:$4 sm:$0xff]  }
  0x4a   :  { %169 = vst [vmem:[#allocation3 + $0x20] sm:$0x1] %v163_v30  ;;  %v245_v40 = vrot.slane %v233_v23, 6  ;;  %v183_v41 = vrot.slane %v181_v10, 4  ;;  %v204_v42 = vrot.slane %v203_v32, 4  ;;  %v1521_v6 = vld [vmem:[#allocation11 + $0xb8] sm:$0xff]  }
  0x4b   :  { %v212_v43 = vor.u32 %v211_v34, %v208_v33  ;;  %v222_v44 = vor.u32 %v221_v38, %v218_v35  ;;  %v243_v45 = vsel %vm1735_vm11, %v1236_v31, %v242_v39  ;;  %v244_v46 = vrot.slane %v242_v39, 4  ;;  %1455 = vmatprep.subr.bf16.mxu1 %v1521_v6  ;;  %v1522_v7 = vld [vmem:[#allocation11 + $0x70] sm:$0xff]   ;;  %v1526_v10 = vld [vmem:[#allocation11 + $0x28] sm:$0xff]   ;;  %v1528_v12 = vld [vmem:[#allocation11 + $0x60] sm:$0xff]  }
  0x4c   :  { %189 = vst [vmem:[#allocation3 + $0x30] sm:$0x3] %v183_v41  ;;  %v247_v47 = vrot.slane %v245_v40, 4  ;;  %v1512_v48 = vld [vmem:[#allocation3 + $0x8] ss:$12 sps:$4 sm:$0xff]   ;;  %v1523_v8 = vld [vmem:[#allocation11 + $0x30] sm:$0xff]   ;;  %v640_v39 = vlaneseq }
  0x4d   :  { %v213_v49 = vsel %vm1741_vm12, %v204_v42, %v212_v43  ;;  %v214_v50 = vrot.slane %v212_v43, 4  ;;  %251 = vst [vmem:[#allocation3 + $0x20] sm:$0xe] %v243_v45  ;;  %v1511_v53 = vld [vmem:[#allocation3 + $0x4] ss:$12 sps:$4 sm:$0xff]   ;;  %v246_v54 = vsel %vm1735_vm11, %v244_v46, %v245_v40  ;;  %v224_v55 = vrot.slane %v222_v44, 4  ;;  %1444 = vmatmul.mubr.bf16.vlgmr.msra.gmra.mxu1 %v1512_v48 }
  0x4e   :  { %228 = vst [vmem:[#allocation3 + $0x1c] sm:$0xe] %v213_v49  ;;  %253 = vst [vmem:[#allocation3 + $0x38] sm:$0x3] %v247_v47  ;;  %531 = vmatprep.mubr.bf16.mxu0 %v1511_v53  ;;  %1447 = vmatprep.mubr.msk.bf16.mxu1 %vm1645_vm0, %v1644_v0  ;;  %v1524_v9 = vld [vmem:[#allocation11 + $0xb0] sm:$0xff]   ;;  %v1527_v11 = vld [vmem:[#allocation11 + $0xa8] sm:$0xff]  }
  0x4f   :  { %v223_v56 = vsel %vm1741_vm12, %v214_v50, %v222_v44  ;;  %252 = vst [vmem:[#allocation3 + $0x2c] sm:$0xf] %v246_v54  ;;  %230 = vst [vmem:[#allocation3 + $0x34] sm:$0x3] %v224_v55  ;;  %532 = vmatmul.mubr.bf16.vlgmr.msra.gmra.mxu0 %v1509_v51  ;;  %1456 = vmatpush3.bf16.msra.mxu1 %v1521_v6  ;;  %v1529_v13 = vld [vmem:[#allocation11 + $0x20] sm:$0xff]   ;;  %v1531_v15 = vld [vmem:[#allocation11 + $0x58] sm:$0xff]  }
  0x50   :  { %229 = vst [vmem:[#allocation3 + $0x28] sm:$0xf] %v223_v56  ;;  %1390 = vmatpush3.bf16.msra.mxu0 %v1520_v5  ;;  %1457 = vmatprep.subr.bf16.mxu1 %v1524_v9  ;;  %v1530_v14 = vld [vmem:[#allocation11 + $0xa0] sm:$0xff]   ;;  %v1532_v16 = vld [vmem:[#allocation11 + $0x18] sm:$0xff]   ;;  %v1534_v18 = vld [vmem:[#allocation11 + $0x50] sm:$0xff]   ;;  %v641_v46 = vshrl.u32 %v640_v39, 7 }
  0x51   :  { %1391 = vmatprep.subr.bf16.mxu0 %v1522_v7  ;;  %v1533_v17 = vld [vmem:[#allocation11 + $0x98] sm:$0xff]   ;;  %v1535_v19 = vld [vmem:[#allocation11 + $0x10] sm:$0xff]   ;;  %v1537_v21 = vld [vmem:[#allocation11 + $0x48] sm:$0xff]  }
  0x52   :  { %v1536_v20 = vld [vmem:[#allocation11 + $0x90] sm:$0xff]   ;;  %v1538_v22 = vld [vmem:[#allocation11 + $0x8] sm:$0xff]   ;;  %v1540_v24 = vld [vmem:[#allocation11 + $0x40] sm:$0xff]   ;;  %vm646_vm13 = vcmp.ge.s32.totalorder %v641_v46, 1 }
  0x53   :  { %1458 = vmatpush3.bf16.msra.mxu1 %v1524_v9  ;;  %v1539_v23 = vld [vmem:[#allocation11 + $0x88] sm:$0xff]   ;;  %v1541_v25 = vld [vmem:[#allocation11] sm:$0xff]  }
  0x54   :  { %1392 = vmatpush3.bf16.msra.mxu0 %v1523_v8  ;;  %1459 = vmatprep.subr.bf16.mxu1 %v1527_v11  ;;  %v1543_v26 = vld [vmem:[#allocation11 + $0x80] sm:$0xff]  }
  0x55   :  { %v258_v57 = vld [vmem:[#allocation3 + $0x18] sm:$0xff]  ;;  %v1270_v33 = vld [vmem:[%s1799_s3] ss:$0 sm:$0xff] }
  0x56   :  { %v1515_v58 = vld [vmem:[#allocation3 + $0x20] ss:$12 sps:$4 sm:$0xff]   ;;  %v262_v62 = vld [vmem:[#allocation3 + $0x30] sm:$0x33] }
  0x57   :  { %v260_v59 = vld [vmem:[#allocation3 + $0x24] sm:$0xff]  ;;  %1448 = vmatmul.mubr.bf16.gmra.mxu1 %v1515_v58  ;;  %v1244_v1 = vcombine.high %v262_v62, %v262_v62  ;;  %v1517_v2 = vld [vmem:[#allocation3 + $0x38] ss:$0 sps:$4 sm:$0x33]   ;;  %v1243_v3 = vcombine.low %v262_v62, %v262_v62  ;;  %v1271_v40 = vld [vmem:[%s1800_s4] ss:$0 sm:$0xff] }
  0x58   :  { %v1513_v61 = vld [vmem:[#allocation3 + $0x1c] ss:$12 sps:$4 sm:$0xff]   ;;  %v1240_v63 = vcombine.low %v258_v57, %v260_v59  ;;  %1451 = vmatprep.mubr.msk.bf16.mxu1 %vm1645_vm0, %v1644_v0  ;;  %v1525_v0 = vld [vmem:[#allocation11 + $0x68] sm:$0xff]   ;;  %1460 = vmatpush3.bf16.msra.mxu1 %v1527_v11  ;;  %v643_v62 = vadd.s32 16, %v641_v46  ;;  %v1310_v37 = vld [vmem:[%s1801_s5] ss:$0 sm:$0xff] }
  0x59   :  { %539 = vmatprep.mubr.bf16.mxu0 %v1513_v61  ;;  %1393 = vmatprep.subr.bf16.mxu0 %v1525_v0  ;;  %s1646_s5 = smov [#allocation12]  }
  0x5a   :  { %540 = vmatmul.mubr.bf16.gmra.mxu0 %v1240_v63  ;;  %1461 = vmatprep.subr.bf16.mxu1 %v1530_v14  ;;  %vm653_vm14 = vcmp.le.s32.totalorder %v643_v62, 16  ;;  %vm663_vm15 = vcmp.ge.s32.totalorder %v643_v62, 19 }
  0x5b   :  { %547 = vmatprep.mubr.bf16.mxu0 %v1244_v1  ;;  %1394 = vmatpush3.bf16.msra.mxu0 %v1526_v10  ;;  %vm678_vm0 = vmor %vm653_vm14, %vm663_vm15 }
  0x5c   :  { %1395 = vmatprep.subr.bf16.mxu0 %v1528_v12  ;;  %1462 = vmatpush3.bf16.msra.mxu1 %v1530_v14  ;;  %v645_v14 = vadd.s32 32, %v641_v46 }
  0x5d   :  { %1463 = vmatprep.subr.bf16.mxu1 %v1533_v17 }
  0x5e   :  { %vm670_vm1 = vcmp.le.s32.totalorder %v645_v14, 34 }
  0x5f   :  { %1452 = vmatmul.mubr.bf16.gmra.mxu1 %v1517_v2  ;;  %1396 = vmatpush3.bf16.msra.mxu0 %v1529_v13 }
  0x60   :  { %1397 = vmatprep.subr.bf16.mxu0 %v1531_v15  ;;  %1464 = vmatpush3.bf16.msra.mxu1 %v1533_v17 }
  0x61   :  { %1465 = vmatprep.subr.bf16.mxu1 %v1536_v20 }
  0x62   :  { %548 = vmatmul.mubr.bf16.gmra.mxu0 %v1243_v3 }
  0x63   :  { %1398 = vmatpush3.bf16.msra.mxu0 %v1532_v16 }
  0x64   :  { %1399 = vmatprep.subr.bf16.mxu0 %v1534_v18  ;;  %1466 = vmatpush3.bf16.msra.mxu1 %v1536_v20 }
  0x65   :  { %1467 = vmatprep.subr.bf16.mxu1 %v1539_v23 }
  0x67   :  { %1400 = vmatpush3.bf16.msra.mxu0 %v1535_v19 }
  0x68   :  { %1401 = vmatprep.subr.bf16.mxu0 %v1537_v21  ;;  %1468 = vmatpush3.bf16.msra.mxu1 %v1539_v23 }
  0x69   :  { %1469 = vmatprep.subr.bf16.mxu1 %v1543_v26 }
  0x6b   :  { %1402 = vmatpush3.bf16.msra.mxu0 %v1538_v22 }
  0x6c   :  { %1403 = vmatprep.subr.bf16.mxu0 %v1540_v24  ;;  %1470 = vmatpush3.bf16.msra.mxu1 %v1543_v26 }
  0x6f   :  { %1404 = vmatpush3.bf16.msra.mxu0 %v1541_v25 }
 0x10d   :  { %v589_v27 = vpop.f32.mrf.mxu1 }
 0x10f   :  { %v1360_v28 = vpop.f32.mrf.mxu0  ;;  %v1445_v29 = vpop.f32.mrf.mxu1 }
 0x111   :  { %v1361_v30 = vpop.f32.mrf.mxu0  ;;  %v592_v31 = vpop.f32.mrf.mxu1 }
 0x112   :  { %v1362_v32 = vadd.f32 %v1361_v30, %v1360_v28 }
 0x113   :  { %v1363_v34 = vpop.f32.mrf.mxu0  ;;  %v1446_v35 = vpop.f32.mrf.mxu1 }
 0x114   :  { %v590_v38 = vadd.f32 %v1362_v32, %v589_v27 }
 0x115   :  { %v1364_v41 = vpop.f32.mrf.mxu0 }
 0x116   :  { %v618_v42 = vmul.f32 %v1270_v33, %v590_v38  ;;  %v1365_v43 = vadd.f32 %v1364_v41, %v1363_v34 }
 0x117   :  { %v597_v44 = vpop.f32.mrf.mxu1 }
 0x118   :  { %v630_v45 = vadd.f32 %v1271_v40, %v618_v42  ;;  %v593_v47 = vadd.f32 %v1365_v43, %v592_v31 }
 0x119   :  { %v1449_v49 = vpop.f32.mrf.mxu1 }
 0x11a   :  { %v1366_v48 = vpop.f32.mrf.mxu0  ;;  %v619_v50 = vmul.f32 %v1270_v33, %v593_v47  ;;  %v635_v54 = vmax.f32 %v630_v45, 0.0 }
 0x11b   :  { %v600_v53 = vpop.f32.mrf.mxu1 }
 0x11c   :  { %v1367_v51 = vpop.f32.mrf.mxu0  ;;  %v631_v56 = vadd.f32 %v1271_v40, %v619_v50  ;;  %v691_v2 = vsel %vm646_vm13, %v635_v54, 0.0 }
 0x11d   :  { %v1368_v55 = vadd.f32 %v1367_v51, %v1366_v48  ;;  %v1450_v58 = vpop.f32.mrf.mxu1 }
 0x11e   :  { %v1369_v57 = vpop.f32.mrf.mxu0  ;;  %v636_v61 = vmax.f32 %v631_v56, 0.0 }
 0x11f   :  { %v598_v59 = vadd.f32 %v1368_v55, %v597_v44  ;;  %v605_v1 = vpop.f32.mrf.mxu1 }
 0x120   :  { %v1370_v63 = vpop.f32.mrf.mxu0  ;;  %v1335_v5 = vpack.c.bf16 %v636_v61, %v691_v2 }
 0x121   :  { %v620_v3 = vmul.f32 %v1270_v33, %v598_v59  ;;  %v1371_v4 = vadd.f32 %v1370_v63, %v1369_v57  ;;  %v1453_v7 = vpop.f32.mrf.mxu1 }
 0x122   :  { %v1372_v6 = vpop.f32.mrf.mxu0  ;;  %1336 = vst [vmem:[#allocation4] sm:$0xff] %v1335_v5  }
 0x123   :  { %v632_v8 = vadd.f32 %v1271_v40, %v620_v3  ;;  %v601_v9 = vadd.f32 %v1371_v4, %v600_v53  ;;  %v608_v10 = vpop.f32.mrf.mxu1 }
 0x124   :  { %v1373_v0 = vpop.f32.mrf.mxu0 }
 0x125   :  { %v621_v11 = vmul.f32 %v1270_v33, %v601_v9  ;;  %v1374_v12 = vadd.f32 %v1373_v0, %v1372_v6  ;;  %v637_v13 = vmax.f32 %v632_v8, 0.0  ;;  %v1454_v16 = vpop.f32.mrf.mxu1 }
 0x126   :  { %v1375_v15 = vpop.f32.mrf.mxu0 }
 0x127   :  { %v633_v17 = vadd.f32 %v1271_v40, %v621_v11  ;;  %v606_v18 = vadd.f32 %v1374_v12, %v605_v1  ;;  %v693_v22 = vsel %vm678_vm0, %v637_v13, 0.0 }
 0x128   :  { %v1376_v19 = vpop.f32.mrf.mxu0 }
 0x129   :  { %v638_v20 = vmax.f32 %v633_v17, 0.0  ;;  %v622_v21 = vmul.f32 %v1270_v33, %v606_v18  ;;  %v726_v23 = vld [vmem:[#allocation4] sm:$0xf]  ;;  %v727_v24 = vld [vmem:[#allocation4 + $0x4] sm:$0xf] }
 0x12a   :  { %v757_v27 = vld [vmem:[#allocation4] sm:$0xe]  ;;  %v730_v28 = vshrl.u32 %v726_v23, 16  ;;  %v733_v29 = vshll.u32 %v726_v23, 16  ;;  %v743_v30 = vshrl.u32 %v727_v24, 16  ;;  %v739_v43 = vshll.u32 %v727_v24, 16 }
 0x12b   :  { %v1340_v25 = vpack.c.bf16 %v638_v20, %v693_v22  ;;  %v634_v26 = vadd.f32 %v1271_v40, %v622_v21  ;;  %v758_v31 = vld [vmem:[#allocation4 + $0x4] sm:$0xf]  ;;  %v1277_v32 = vrot.slane %v757_v27, 9  ;;  %v722_v38 = vld [vmem:[#allocation4] sm:$0xf] }
 0x12c   :  { %v765_v35 = vrot.slane %v758_v31, 5  ;;  %v723_v39 = vld [vmem:[#allocation4 + $0x4] sm:$0xf]  ;;  %v732_v41 = vrot.slane %v730_v28, 4  ;;  %v735_v42 = vrot.slane %v733_v29, 5  ;;  %v745_v33 = vrot.slane %v743_v30, 4 }
 0x12d   :  { %1343 = vst [vmem:[#allocation4 + $0x8] sm:$0xff] %v1340_v25   ;;  %v639_v34 = vmax.f32 %v634_v26, 0.0  ;;  %724 = vst [vmem:[#allocation5] sm:$0xf] %v722_v38  ;;  %v741_v47 = vrot.slane %v739_v43, 5 }
 0x12e   :  { %725 = vst [vmem:[#allocation5 + $0xc] sm:$0xf] %v723_v39  ;;  %v766_v40 = vsel %vm1711_vm8, %v1277_v32, %v765_v35  ;;  %v736_v46 = vor.u32 %v735_v42, %v732_v41  ;;  %v767_v50 = vrot.slane %v765_v35, 4 }
 0x12f   :  { %v695_v44 = vsel %vm670_vm1, %v639_v34, 0.0  ;;  %772 = vst [vmem:[#allocation5 + $0x8] sm:$0xf] %v766_v40  ;;  %v746_v49 = vor.u32 %v745_v33, %v741_v47 }
 0x130   :  { %v1321_v45 = vpack.c.bf16 %v695_v44, %v695_v44  ;;  %v737_v48 = vrot.slane %v736_v46, 4 }
 0x131   :  { %v747_v2 = vrot.slane %v746_v49, 4 }
 0x132   :  { %721 = vst [vmem:[#allocation4 + $0x10] sm:$0x3] %v1321_v45  ;;  %v742_v55 = vsel %vm1717_vm9, %v737_v48, %v741_v47 }
 0x133   :  { %755 = vst [vmem:[#allocation5 + $0x4] sm:$0xf] %v742_v55 }
 0x134   :  { %v728_v51 = vld [vmem:[#allocation4 + $0x8] sm:$0x1]  ;;  %v791_v53 = vld [vmem:[#allocation4 + $0x8] sm:$0xe]  ;;  %v792_v54 = vld [vmem:[#allocation4 + $0xc] sm:$0xf] }
 0x135   :  { %v795_v56 = vshrl.u32 %v791_v53, 16  ;;  %v798_v57 = vshll.u32 %v791_v53, 16  ;;  %v804_v58 = vshrl.u32 %v792_v54, 16  ;;  %v807_v59 = vshll.u32 %v792_v54, 16  ;;  %v826_v61 = vld [vmem:[#allocation4 + $0x8] sm:$0xc] }
 0x136   :  { %v827_v62 = vld [vmem:[#allocation4 + $0xc] sm:$0xf]  ;;  %v1279_v63 = vrot.slane %v826_v61, 10  ;;  %v759_v1 = vld [vmem:[#allocation4 + $0x8] sm:$0x1]  ;;  %v749_v7 = vshll.u32 %v728_v51, 16 }
 0x137   :  { %v797_v3 = vrot.slane %v795_v56, 5  ;;  %v800_v4 = vrot.slane %v798_v57, 6  ;;  %v834_v5 = vrot.slane %v827_v62, 6  ;;  %v768_v6 = vrot.slane %v759_v1, 5  ;;  %v774_v8 = vld [vmem:[#allocation4 + $0x8] sm:$0xe] }
 0x138   :  { %v775_v9 = vld [vmem:[#allocation4 + $0xc] sm:$0xf]  ;;  %v806_v0 = vrot.slane %v804_v58, 5  ;;  %v1278_v15 = vrot.slane %v774_v8, 9  ;;  %v751_v19 = vrot.slane %v749_v7, 5  ;;  %v809_v24 = vrot.slane %v807_v59, 6 }
 0x139   :  { %v836_v10 = vrot.slane %v834_v5, 4  ;;  %v793_v11 = vld [vmem:[#allocation4 + $0x10] sm:$0x3]  ;;  %v769_v13 = vsel %vm1711_vm8, %v767_v50, %v768_v6  ;;  %v835_v14 = vsel %vm1735_vm11, %v1279_v63, %v834_v5  ;;  %v782_v21 = vrot.slane %v775_v9, 5  ;;  %v1544_v41 = vld [vmem:[#allocation5] ss:$12 sps:$4 sm:$0xff]  }
 0x13a   :  { %v828_v12 = vld [vmem:[#allocation4 + $0x10] sm:$0x3]  ;;  %v814_v16 = vshrl.u32 %v793_v11, 16  ;;  %v817_v17 = vshll.u32 %v793_v11, 16  ;;  %773 = vst [vmem:[#allocation5 + $0x14] sm:$0xf] %v769_v13  ;;  %v801_v23 = vor.u32 %v800_v4, %v797_v3  ;;  %v752_v25 = vsel %vm1717_vm9, %v747_v2, %v751_v19 }
 0x13b   :  { %v837_v18 = vrot.slane %v828_v12, 6  ;;  %841 = vst [vmem:[#allocation5 + $0x20] sm:$0xf] %v835_v14  ;;  %v776_v20 = vld [vmem:[#allocation4 + $0x10] sm:$0x1]  ;;  %v783_v29 = vsel %vm1711_vm8, %v1278_v15, %v782_v21  ;;  %v784_v30 = vrot.slane %v782_v21, 4  ;;  %v810_v32 = vor.u32 %v809_v24, %v806_v0 }
 0x13c   :  { %v785_v22 = vrot.slane %v776_v20, 5  ;;  %v816_v27 = vrot.slane %v814_v16, 5  ;;  %v819_v28 = vrot.slane %v817_v17, 6  ;;  %756 = vst [vmem:[#allocation5 + $0x10] sm:$0xf] %v752_v25  ;;  %v802_v31 = vrot.slane %v801_v23, 4 }
 0x13d   :  { %v838_v26 = vsel %vm1735_vm11, %v836_v10, %v837_v18  ;;  %789 = vst [vmem:[#allocation5 + $0x18] sm:$0xf] %v783_v29  ;;  %v812_v36 = vrot.slane %v810_v32, 4  ;;  %v1311_v51 = vld [vmem:[%s1802_s6] ss:$0 sm:$0xff]  ;;  %v1195_v57 = vld [vmem:[#allocation6 + $0x2] sm:$0xff] }
 0x13e   :  { %842 = vst [vmem:[#allocation5 + $0x2c] sm:$0xf] %v838_v26  ;;  %v820_v34 = vor.u32 %v819_v28, %v816_v27  ;;  %v786_v35 = vsel %vm1711_vm8, %v784_v30, %v785_v22  ;;  %v811_v60 = vsel %vm1741_vm12, %v802_v31, %v810_v32  ;;  %v1196_v3 = vld [vmem:[#allocation6 + $0xa] sm:$0xff]  ;;  %v1203_v11 = vld [vmem:[#allocation6 + $0x16] sm:$0xff]  ;;  %v1204_v17 = vld [vmem:[#allocation6 + $0x1e] sm:$0xff]  ;;  %s1216_s6 = sshll.u32 %s1646_s5, 4  ;;  %s1217_s6 = int_to_ptr.vmem [resolvable:$true] %s1216_s6 }
 0x13f   :  { %790 = vst [vmem:[#allocation5 + $0x24] sm:$0xf] %v786_v35  ;;  %824 = vst [vmem:[#allocation5 + $0x1c] sm:$0xf] %v811_v60  ;;  %s1611_s23 = scalar_lea.vmem %s1217_s6, 512  ;;  %p1616_p2 = scmp.lt.s32.totalorder %s1217_s6, %s1217_s6 }
 0x140   :  { %v821_v39 = vsel %vm1741_vm12, %v812_v36, %v820_v34  ;;  %p1612_p1 = scmp.ne.s32.totalorder %s1217_s6, %s1611_s23  ;;  %p1617_p3 = scmp.lt.s32.totalorder %s1611_s23, %s1611_s23 }
 0x141   :  { %v1542_v38 = vld [vmem:[#allocation5 + $0x8] ss:$12 sps:$4 sm:$0xff]   ;;  %825 = vst [vmem:[#allocation5 + $0x28] sm:$0xf] %v821_v39 }
 0x142   :  { %1471 = vmatprep.mubr.bf16.mxu1 %v1542_v38  ;;  %p1618_p4 = por %p1617_p3, %p1616_p2 }
 0x143   :  { %v1546_v42 = vld [vmem:[#allocation5 + $0x4] ss:$12 sps:$4 sm:$0xff]  }
 0x144   :  { %1107 = vmatprep.mubr.bf16.mxu0 %v1546_v42  ;;  %p1619_p5 = pnand %p1618_p4, %p1612_p1 }
 0x145   :  { %v1547_v33 = vld [vmem:[#allocation5 + $0x20] ss:$12 sps:$4 sm:$0xff]   ;;  %1108 = vmatmul.mubr.bf16.vlgmr.msra.gmra.mxu0 %v1544_v41 }
 0x146   :  { %1472 = vmatmul.mubr.bf16.vlgmr.msra.gmra.mxu1 %v1547_v33  ;;  %v1550_v43 = vld [vmem:[#allocation5 + $0x18] ss:$12 sps:$4 sm:$0xff]  }
 0x148   :  { %v1548_v52 = vld [vmem:[#allocation5 + $0x1c] ss:$12 sps:$4 sm:$0xff]  }
 0x149   :  { %1115 = vmatprep.mubr.bf16.mxu0 %v1548_v52 }
 0x14d   :  { %1116 = vmatmul.mubr.bf16.gmra.mxu0 %v1550_v43 }
 0x205   :  { %v1405_v44 = vpop.f32.mrf.mxu0 }
 0x206   :  { %v1473_v40 = vpop.f32.mrf.mxu1 }
 0x207   :  { %v1406_v45 = vpop.f32.mrf.mxu0 }
 0x208   :  { %v1158_v46 = vpop.f32.mrf.mxu1  ;;  %v1407_v47 = vadd.f32 %v1406_v45, %v1405_v44 }
 0x209   :  { %v1408_v48 = vpop.f32.mrf.mxu0 }
 0x20a   :  { %v1474_v49 = vpop.f32.mrf.mxu1  ;;  %v1159_v50 = vadd.f32 %v1407_v47, %v1158_v46 }
 0x20b   :  { %v1409_v53 = vpop.f32.mrf.mxu0 }
 0x20c   :  { %v1161_v54 = vpop.f32.mrf.mxu1  ;;  %v1180_v55 = vmul.f32 %v1310_v37, %v1159_v50  ;;  %v1410_v56 = vadd.f32 %v1409_v53, %v1408_v48 }
 0x20d   :  { %v1411_v58 = vpop.f32.mrf.mxu0 }
 0x20e   :  { %v1191_v59 = vadd.f32 %v1311_v51, %v1180_v55  ;;  %v1162_v61 = vadd.f32 %v1410_v56, %v1161_v54 }
 0x20f   :  { %v1412_v62 = vpop.f32.mrf.mxu0 }
 0x210   :  { %v1197_v63 = vadd.f32 %v1195_v57, %v1191_v59  ;;  %v1181_v1 = vmul.f32 %v1310_v37, %v1162_v61  ;;  %v1413_v2 = vadd.f32 %v1412_v62, %v1411_v58 }
 0x211   :  { %v1414_v4 = vpop.f32.mrf.mxu0 }
 0x212   :  { %v1199_v5 = vmax.f32 %v1197_v63, 0.0  ;;  %v1192_v6 = vadd.f32 %v1311_v51, %v1181_v1  ;;  %v1167_v7 = vadd.f32 %v1473_v40, %v1413_v2 }
 0x213   :  { %v1415_v8 = vpop.f32.mrf.mxu0 }
 0x214   :  { %1201 = vst [vmem:[#allocation12] sm:$0xff] %v1199_v5  ;;  %v1198_v9 = vadd.f32 %v1196_v3, %v1192_v6  ;;  %v1182_v0 = vmul.f32 %v1310_v37, %v1167_v7  ;;  %v1416_v10 = vadd.f32 %v1415_v8, %v1414_v4 }
 0x216   :  { %v1200_v12 = vmax.f32 %v1198_v9, 0.0  ;;  %v1193_v13 = vadd.f32 %v1311_v51, %v1182_v0  ;;  %v1170_v14 = vadd.f32 %v1474_v49, %v1416_v10 }
 0x218   :  { %1202 = vst [vmem:[#allocation12 + $0x8] sm:$0xff] %v1200_v12  ;;  %v1205_v15 = vadd.f32 %v1203_v11, %v1193_v13  ;;  %v1183_v16 = vmul.f32 %v1310_v37, %v1170_v14 }
 0x21a   :  { %v1207_v18 = vmax.f32 %v1205_v15, 0.0  ;;  %v1194_v19 = vadd.f32 %v1311_v51, %v1183_v16 }
 0x21c   :  { %1209 = vst [vmem:[#allocation12 + $0x10] sm:$0xff] %v1207_v18  ;;  %v1206_v20 = vadd.f32 %v1204_v17, %v1194_v19 }
 0x21e   :  { %v1208_v21 = vmax.f32 %v1206_v20, 0.0 }
 0x220   :  { %1210 = vst [vmem:[#allocation12 + $0x18] sm:$0xff] %v1208_v21 }
 0x221   :  { %1622 = shalt.err (!%p1619_p5)
}
 0x222   :  { %1222 = dma.vmem_to_hbm [thread:$0]  %s1217_s6, 512, %s1803_s7, [#allocation8], %s1641_s11, %s1641_s11, %s1642_s12  }
 0x223   :  { %1635 = dma.done.wait [#allocation8], 512  }
 0x224   :  { %1636 = vsyncadd [#allocation8], 4294966784 }
 0x225   :  { %1226 = vsyncpa [#allocation7], 1 }
 0x226   :  { %1227 = vsyncpa [#allocation10], 1 }
 0x227   :  { %1228 = vsyncpa [#allocation8], 1 }

</bundles_post_ra>
